<compile_context>
chip_gen: v5e
topology: v5e:2x2
jax: 0.10.0
libtpu: 0.0.40
codegen_flags: <defaults>
</compile_context>

<pallas_src>
import functools

import jax
import jax.numpy as jnp
from jax.experimental import pallas as pl
from jax.experimental.pallas import tpu as pltpu


# ---------------------------------------------------------------------------
# Fused backbone(conv3x3+ReLU) -> neck(GAP) -> head(linear) kernel.
#
# Grid: (B, H // tile_h).  Per grid step (b, j):
#   * the whole padded, width-tapped image of batch element b is VMEM-resident
#     (its block index depends only on b, so Pallas DMAs it once per image and
#     double-buffers image b+1 against the compute of image b),
#   * conv-output rows [j*tile_h, (j+1)*tile_h) x W are computed with 3 MXU
#     matmuls (one per vertical tap) of shape (tile_h*W, 3*Cin) x (3*Cin, Cout),
#   * bias + ReLU, then the partial spatial sum is accumulated in f32 scratch,
#   * on the last j step: scale by 1/(H*W) (GAP), head matmul + bias, write the
#     (1, num_classes) logits row for batch element b.
# ---------------------------------------------------------------------------
def _fused_arch_kernel(x_ref, cw_ref, cb_ref, hw_ref, hb_ref, o_ref, acc_ref,
                       *, tile_h, width, inv_hw):
    j = pl.program_id(1)

    @pl.when(j == 0)
    def _init():
        acc_ref[...] = jnp.zeros_like(acc_ref)

    tm = tile_h * width                       # conv-output rows this step
    cout = cw_ref.shape[-1]

    conv = jnp.zeros((tm, cout), jnp.float32)
    for kh in range(3):                       # vertical taps, done in-kernel
        start = pl.multiple_of(j * tm + kh * width, 8)
        slab = x_ref[0, pl.ds(start, tm), :]  # (tm, 3*Cin), aligned slice
        conv = conv + jnp.dot(slab, cw_ref[kh],
                              preferred_element_type=jnp.float32)

    conv = jnp.maximum(conv + cb_ref[...], 0.0)            # bias + ReLU
    acc_ref[...] += jnp.sum(conv, axis=0, keepdims=True)   # neck partial sum

    @pl.when(j == pl.num_programs(1) - 1)
    def _finalize():
        pooled = acc_ref[...] * inv_hw                     # GAP  (1, Cout)
        logits = jnp.dot(pooled, hw_ref[...],
                         preferred_element_type=jnp.float32) + hb_ref[...]
        o_ref[...] = logits.reshape(o_ref.shape)


def forward_tensor(x_nchw, params, *, tile_h=8):
    """BaseArch._forward_tensor (mode='tensor'): head(neck(backbone(x)))."""
    B, Cin, H, W = x_nchw.shape
    Cout = params["conv_w"].shape[-1]
    num_classes = params["head_w"].shape[-1]
    # tile_h*W is the M-tile of the conv matmul; at real resolutions pick it so
    # tile_h*W lands in the ~1024-2048 row sweet spot while double-buffered
    # tiles stay inside the scoped-VMEM default (16/32 MiB; 64 MiB physical on
    # v7x).  Demo: 8*16 = 128 rows -> 2 accumulation steps per image.
    assert H % tile_h == 0, "H must be divisible by tile_h"
    assert W % 8 == 0, "W must be a multiple of 8 for aligned sublane slices"
    # TODO(synk): pad H/W in the wrapper for shapes violating the asserts.

    x = jnp.transpose(x_nchw, (0, 2, 3, 1)).astype(jnp.float32)  # NCHW -> NHWC
    xp = jnp.pad(x, ((0, 0), (1, 1), (1, 1), (0, 0)))            # (B,H+2,W+2,C)
    # Width-direction taps only (3x concat, NOT the 9x im2col): new channel
    # index is kw*Cin + ci, matching conv_w.reshape(3, 3*Cin, Cout) below.
    x_rows = jnp.concatenate([xp[:, :, kw:kw + W, :] for kw in range(3)],
                             axis=-1)                            # (B,H+2,W,3Cin)
    x_rows = x_rows.reshape(B, (H + 2) * W, 3 * Cin)

    cw = params["conv_w"].reshape(3, 3 * Cin, Cout)   # (kh, kw*Cin+ci, co)
    cb = params["conv_b"].reshape(1, Cout)
    hw = params["head_w"]
    hb = params["head_b"].reshape(1, num_classes)

    kernel = functools.partial(_fused_arch_kernel, tile_h=tile_h, width=W,
                               inv_hw=1.0 / float(H * W))
    out = pl.pallas_call(
        kernel,
        out_shape=jax.ShapeDtypeStruct((B, 1, num_classes), jnp.float32),
        grid_spec=pltpu.PrefetchScalarGridSpec(
            num_scalar_prefetch=0,
            grid=(B, H // tile_h),
            in_specs=[
                # padded image of batch b, resident across the spatial axis
                pl.BlockSpec((1, (H + 2) * W, 3 * Cin), lambda b, j: (b, 0, 0)),
                pl.BlockSpec((3, 3 * Cin, Cout), lambda b, j: (0, 0, 0)),
                pl.BlockSpec((1, Cout), lambda b, j: (0, 0)),
                pl.BlockSpec((Cout, num_classes), lambda b, j: (0, 0)),
                pl.BlockSpec((1, num_classes), lambda b, j: (0, 0)),
            ],
            out_specs=pl.BlockSpec((1, 1, num_classes), lambda b, j: (b, 0, 0)),
            scratch_shapes=[pltpu.VMEM((1, Cout), jnp.float32)],
        ),
        compiler_params=pltpu.CompilerParams(
            dimension_semantics=("parallel", "arbitrary")),
    )(x_rows, cw, cb, hw, hb)
    return out.reshape(B, num_classes)


def make_params(key, cin=4, cout=32, num_classes=10):
    # conv_w layout is HWIO = (kh, kw, Cin, Cout).  A real PyTorch Conv2d
    # weight (Cout, Cin, kh, kw) must be permuted with .transpose(2, 3, 1, 0)
    # before being handed to forward_tensor.
    k1, k2, k3, k4 = jax.random.split(key, 4)
    conv_w = jax.random.normal(k1, (3, 3, cin, cout), jnp.float32) * 0.1
    conv_b = jax.random.normal(k2, (cout,), jnp.float32) * 0.01
    head_w = jax.random.normal(k3, (cout, num_classes), jnp.float32) * 0.1
    head_b = jax.random.normal(k4, (num_classes,), jnp.float32) * 0.01
    return dict(conv_w=conv_w, conv_b=conv_b, head_w=head_w, head_b=head_b)


def forward_reference(x_nchw, params):
    """Plain-JAX reference of the same backbone -> neck -> head pipeline."""
    x = jnp.transpose(x_nchw, (0, 2, 3, 1)).astype(jnp.float32)
    conv = jax.lax.conv_general_dilated(
        x, params["conv_w"], window_strides=(1, 1), padding="SAME",
        dimension_numbers=("NHWC", "HWIO", "NHWC"))
    feat = jnp.maximum(conv + params["conv_b"], 0.0)
    pooled = feat.mean(axis=(1, 2))
    return pooled @ params["head_w"] + params["head_b"]


if __name__ == "__main__":
    # TODO(synk): loss / metric / predict modes depend on help_build-configured
    # losses and DataSample postprocess; only the mode="tensor" forward path is
    # implemented here.
    key = jax.random.PRNGKey(0)
    kx, kp = jax.random.split(key)
    B, Cin, H, W = 2, 4, 16, 16
    x = jax.random.normal(kx, (B, Cin, H, W), jnp.float32)        # NCHW input
    params = make_params(kp, cin=Cin, cout=32, num_classes=10)

    fwd = jax.jit(functools.partial(forward_tensor, tile_h=8))
    out = jax.block_until_ready(fwd(x, params))

    ref = forward_reference(x, params)
    assert out.shape == (B, 10)
    assert jnp.allclose(out, ref, atol=1e-3, rtol=1e-3), "mismatch vs reference"
    print("KERNEL_OK")
</pallas_src>

<mosaic_0001>
module attributes {stable_mosaic.version = 11 : i64} {
  func.func @_fused_arch_kernel(%arg0: i32, %arg1: i32, %arg2: memref<1x288x12xf32, #tpu.memory_space<vmem>>, %arg3: memref<3x12x32xf32, #tpu.memory_space<vmem>>, %arg4: memref<1x32xf32, #tpu.memory_space<vmem>>, %arg5: memref<32x10xf32, #tpu.memory_space<vmem>>, %arg6: memref<1x10xf32, #tpu.memory_space<vmem>>, %arg7: memref<1x1x10xf32, #tpu.memory_space<vmem>>, %arg8: memref<1x32xf32, #tpu.memory_space<vmem>>) attributes {dimension_semantics = [#tpu.dimension_semantics<parallel>, #tpu.dimension_semantics<arbitrary>], iteration_bounds = array<i64: 2, 2>, scalar_prefetch = 0 : i64, scratch_operands = 1 : i64, tpu.core_type = #tpu.core_type<tc>, window_params = [{transform_indices = @transform_0, window_bounds = array<i64: 1, 288, 12>}, {pipeline_mode = #tpu.pipeline_mode<synchronous>, transform_indices = @transform_1, window_bounds = array<i64: 3, 12, 32>}, {pipeline_mode = #tpu.pipeline_mode<synchronous>, transform_indices = @transform_2, window_bounds = array<i64: 1, 32>}, {pipeline_mode = #tpu.pipeline_mode<synchronous>, transform_indices = @transform_3, window_bounds = array<i64: 32, 10>}, {pipeline_mode = #tpu.pipeline_mode<synchronous>, transform_indices = @transform_4, window_bounds = array<i64: 1, 10>}, {transform_indices = @transform_5, window_bounds = array<i64: 1, 1, 10>}]} {
    %c0_i32 = arith.constant 0 : i32
    %0 = arith.cmpi eq, %arg1, %c0_i32 : i32
    %1 = arith.extui %0 : i1 to i32
    %c0_i32_0 = arith.constant 0 : i32
    %2 = arith.cmpi ne, %1, %c0_i32_0 : i32
    scf.if %2 {
      %cst_28 = arith.constant 0.000000e+00 : f32
      %47 = vector.broadcast %cst_28 : f32 to vector<1x32xf32>
      %c0_29 = arith.constant 0 : index
      %c0_30 = arith.constant 0 : index
      %48 = vector.load %arg8[%c0_29, %c0_30] : memref<1x32xf32, #tpu.memory_space<vmem>>, vector<1x32xf32>
      tpu.vector_store %arg8[%c0_29, %c0_30], %47 {strides = array<i32>} : memref<1x32xf32, #tpu.memory_space<vmem>>, vector<1x32xf32>,
    } else {
    }
    %cst = arith.constant 0.000000e+00 : f32
    %3 = vector.broadcast %cst : f32 to vector<128x32xf32>
    %c128_i32 = arith.constant 128 : i32
    %4 = arith.muli %arg1, %c128_i32 : i32
    %c0_i32_1 = arith.constant 0 : i32
    %5 = arith.addi %4, %c0_i32_1 : i32
    %6 = tpu.assume_multiple %5, 8 : i32
    %c0 = arith.constant 0 : index
    %7 = arith.index_cast %6 : i32 to index
    %c0_2 = arith.constant 0 : index
    %8 = vector.load %arg2[%c0, %7, %c0_2] : memref<1x288x12xf32, #tpu.memory_space<vmem>>, vector<1x128x12xf32>
    %9 = vector.shape_cast %8 : vector<1x128x12xf32> to vector<128x12xf32>
    %c0_3 = arith.constant 0 : index
    %c0_4 = arith.constant 0 : index
    %c0_5 = arith.constant 0 : index
    %10 = vector.load %arg3[%c0_3, %c0_4, %c0_5] : memref<3x12x32xf32, #tpu.memory_space<vmem>>, vector<1x12x32xf32>
    %11 = vector.shape_cast %10 : vector<1x12x32xf32> to vector<12x32xf32>
    %cst_6 = arith.constant dense<0.000000e+00> : vector<128x32xf32>
    %12 = tpu.matmul %9, %11, %cst_6 {dimension_numbers = #tpu.dot_dimension_numbers<[1], [0], [0], [1], [0, 0, 1, 1], [], []>} : vector<128x12xf32>, vector<12x32xf32>, vector<128x32xf32> -> vector<128x32xf32>
    %13 = arith.addf %3, %12 : vector<128x32xf32>
    %c128_i32_7 = arith.constant 128 : i32
    %14 = arith.muli %arg1, %c128_i32_7 : i32
    %c16_i32 = arith.constant 16 : i32
    %15 = arith.addi %14, %c16_i32 : i32
    %16 = tpu.assume_multiple %15, 8 : i32
    %c0_8 = arith.constant 0 : index
    %17 = arith.index_cast %16 : i32 to index
    %c0_9 = arith.constant 0 : index
    %18 = vector.load %arg2[%c0_8, %17, %c0_9] : memref<1x288x12xf32, #tpu.memory_space<vmem>>, vector<1x128x12xf32>
    %19 = vector.shape_cast %18 : vector<1x128x12xf32> to vector<128x12xf32>
    %c1 = arith.constant 1 : index
    %c0_10 = arith.constant 0 : index
    %c0_11 = arith.constant 0 : index
    %20 = vector.load %arg3[%c1, %c0_10, %c0_11] : memref<3x12x32xf32, #tpu.memory_space<vmem>>, vector<1x12x32xf32>
    %21 = vector.shape_cast %20 : vector<1x12x32xf32> to vector<12x32xf32>
    %cst_12 = arith.constant dense<0.000000e+00> : vector<128x32xf32>
    %22 = tpu.matmul %19, %21, %cst_12 {dimension_numbers = #tpu.dot_dimension_numbers<[1], [0], [0], [1], [0, 0, 1, 1], [], []>} : vector<128x12xf32>, vector<12x32xf32>, vector<128x32xf32> -> vector<128x32xf32>
    %23 = arith.addf %13, %22 : vector<128x32xf32>
    %c128_i32_13 = arith.constant 128 : i32
    %24 = arith.muli %arg1, %c128_i32_13 : i32
    %c32_i32 = arith.constant 32 : i32
    %25 = arith.addi %24, %c32_i32 : i32
    %26 = tpu.assume_multiple %25, 8 : i32
    %c0_14 = arith.constant 0 : index
    %27 = arith.index_cast %26 : i32 to index
    %c0_15 = arith.constant 0 : index
    %28 = vector.load %arg2[%c0_14, %27, %c0_15] : memref<1x288x12xf32, #tpu.memory_space<vmem>>, vector<1x128x12xf32>
    %29 = vector.shape_cast %28 : vector<1x128x12xf32> to vector<128x12xf32>
    %c2 = arith.constant 2 : index
    %c0_16 = arith.constant 0 : index
    %c0_17 = arith.constant 0 : index
    %30 = vector.load %arg3[%c2, %c0_16, %c0_17] : memref<3x12x32xf32, #tpu.memory_space<vmem>>, vector<1x12x32xf32>
    %31 = vector.shape_cast %30 : vector<1x12x32xf32> to vector<12x32xf32>
    %cst_18 = arith.constant dense<0.000000e+00> : vector<128x32xf32>
    %32 = tpu.matmul %29, %31, %cst_18 {dimension_numbers = #tpu.dot_dimension_numbers<[1], [0], [0], [1], [0, 0, 1, 1], [], []>} : vector<128x12xf32>, vector<12x32xf32>, vector<128x32xf32> -> vector<128x32xf32>
    %33 = arith.addf %23, %32 : vector<128x32xf32>
    %c0_19 = arith.constant 0 : index
    %c0_20 = arith.constant 0 : index
    %34 = vector.load %arg4[%c0_19, %c0_20] : memref<1x32xf32, #tpu.memory_space<vmem>>, vector<1x32xf32>
    %35 = vector.broadcast %34 : vector<1x32xf32> to vector<128x32xf32>
    %36 = arith.addf %33, %35 : vector<128x32xf32>
    %cst_21 = arith.constant 0.000000e+00 : f32
    %37 = vector.broadcast %cst_21 : f32 to vector<128x32xf32>
    %38 = arith.maximumf %36, %37 : vector<128x32xf32>
    %c0_22 = arith.constant 0 : index
    %c0_23 = arith.constant 0 : index
    %39 = vector.load %arg8[%c0_22, %c0_23] : memref<1x32xf32, #tpu.memory_space<vmem>>, vector<1x32xf32>
    %cst_24 = arith.constant dense<0.000000e+00> : vector<32xf32>
    %40 = vector.multi_reduction <add>, %38, %cst_24 [0] : vector<128x32xf32> to vector<32xf32>
    %41 = vector.shape_cast %40 : vector<32xf32> to vector<1x32xf32>
    %42 = arith.addf %39, %41 : vector<1x32xf32>
    %c0_25 = arith.constant 0 : index
    %c0_26 = arith.constant 0 : index
    %43 = vector.load %arg8[%c0_25, %c0_26] : memref<1x32xf32, #tpu.memory_space<vmem>>, vector<1x32xf32>
    tpu.vector_store %arg8[%c0_25, %c0_26], %42 {strides = array<i32>} : memref<1x32xf32, #tpu.memory_space<vmem>>, vector<1x32xf32>,
    %c1_i32 = arith.constant 1 : i32
    %44 = arith.cmpi eq, %arg1, %c1_i32 : i32
    %45 = arith.extui %44 : i1 to i32
    %c0_i32_27 = arith.constant 0 : i32
    %46 = arith.cmpi ne, %45, %c0_i32_27 : i32
    scf.if %46 {
      %c0_28 = arith.constant 0 : index
      %c0_29 = arith.constant 0 : index
      %47 = vector.load %arg8[%c0_28, %c0_29] : memref<1x32xf32, #tpu.memory_space<vmem>>, vector<1x32xf32>
      %cst_30 = arith.constant 3.906250e-03 : f32
      %48 = vector.broadcast %cst_30 : f32 to vector<1x32xf32>
      %49 = arith.mulf %47, %48 : vector<1x32xf32>
      %c0_31 = arith.constant 0 : index
      %c0_32 = arith.constant 0 : index
      %50 = vector.load %arg5[%c0_31, %c0_32] : memref<32x10xf32, #tpu.memory_space<vmem>>, vector<32x10xf32>
      %cst_33 = arith.constant dense<0.000000e+00> : vector<1x10xf32>
      %51 = tpu.matmul %49, %50, %cst_33 {dimension_numbers = #tpu.dot_dimension_numbers<[1], [0], [0], [1], [0, 0, 1, 1], [], []>} : vector<1x32xf32>, vector<32x10xf32>, vector<1x10xf32> -> vector<1x10xf32>
      %c0_34 = arith.constant 0 : index
      %c0_35 = arith.constant 0 : index
      %52 = vector.load %arg6[%c0_34, %c0_35] : memref<1x10xf32, #tpu.memory_space<vmem>>, vector<1x10xf32>
      %53 = arith.addf %51, %52 : vector<1x10xf32>
      %54 = vector.shape_cast %53 : vector<1x10xf32> to vector<1x1x10xf32>
      %c0_36 = arith.constant 0 : index
      %c0_37 = arith.constant 0 : index
      %c0_38 = arith.constant 0 : index
      %55 = vector.load %arg7[%c0_36, %c0_37, %c0_38] : memref<1x1x10xf32, #tpu.memory_space<vmem>>, vector<1x1x10xf32>
      tpu.vector_store %arg7[%c0_36, %c0_37, %c0_38], %54 {strides = array<i32>} : memref<1x1x10xf32, #tpu.memory_space<vmem>>, vector<1x1x10xf32>,
    } else {
    }
    return
  }
  func.func @transform_0(%arg0: i32, %arg1: i32) -> (i32, i32, i32) {
    %c0_i32 = arith.constant 0 : i32
    %c0_i32_0 = arith.constant 0 : i32
    %c0_i32_1 = arith.constant 0 : i32
    return %arg0, %c0_i32, %c0_i32_0 : i32, i32, i32
  }
  func.func @transform_1(%arg0: i32, %arg1: i32) -> (i32, i32, i32) {
    %c0_i32 = arith.constant 0 : i32
    %c0_i32_0 = arith.constant 0 : i32
    %c0_i32_1 = arith.constant 0 : i32
    %c0_i32_2 = arith.constant 0 : i32
    return %c0_i32, %c0_i32_0, %c0_i32_1 : i32, i32, i32
  }
  func.func @transform_2(%arg0: i32, %arg1: i32) -> (i32, i32) {
    %c0_i32 = arith.constant 0 : i32
    %c0_i32_0 = arith.constant 0 : i32
    %c0_i32_1 = arith.constant 0 : i32
    return %c0_i32, %c0_i32_0 : i32, i32
  }
  func.func @transform_3(%arg0: i32, %arg1: i32) -> (i32, i32) {
    %c0_i32 = arith.constant 0 : i32
    %c0_i32_0 = arith.constant 0 : i32
    %c0_i32_1 = arith.constant 0 : i32
    return %c0_i32, %c0_i32_0 : i32, i32
  }
  func.func @transform_4(%arg0: i32, %arg1: i32) -> (i32, i32) {
    %c0_i32 = arith.constant 0 : i32
    %c0_i32_0 = arith.constant 0 : i32
    %c0_i32_1 = arith.constant 0 : i32
    return %c0_i32, %c0_i32_0 : i32, i32
  }
  func.func @transform_5(%arg0: i32, %arg1: i32) -> (i32, i32, i32) {
    %c0_i32 = arith.constant 0 : i32
    %c0_i32_0 = arith.constant 0 : i32
    %c0_i32_1 = arith.constant 0 : i32
    return %arg0, %c0_i32, %c0_i32_0 : i32, i32, i32
  }
}

</mosaic_0001>

<bundles_post_ra>
// kernel: forward_tensor.1
= control target key start
LH: loop header
LB: loop body
LE: loop exit
PB: predicated region body
PF: predicated region fallthrough
CT: control target
= control target key end

     0   :  { %10 = vsyncpa [#allocation4], 0  ;;  %s1481_s0 = inlined_call_operand.vmem [shape: f32[2,288,12], index: 0, kind: input, shape index: {}]   ;;  %s1482_s1 = inlined_call_operand.vmem [shape: f32[3,12,32], index: 1, kind: input, shape index: {}]   ;;  %s1483_s2 = inlined_call_operand.vmem [shape: f32[1,32], index: 2, kind: input, shape index: {}]   ;;  %s1484_s3 = inlined_call_operand.vmem [shape: f32[32,10], index: 3, kind: input, shape index: {}]   ;;  %s1485_s4 = inlined_call_operand.vmem [shape: f32[1,10], index: 4, kind: input, shape index: {}]   ;;  %s1486_s5 = inlined_call_operand.hbm [shape: f32[2,1,10], index: 5, kind: output, shape index: {}]  }
   0x1   :  { %12 = vsyncpa [#allocation4 + $0x1], 0  ;;  %s1177_s18 = smov 0   ;;  %s1179_s19 = smov 0  }
   0x2   :  { %s1181_s20 = smov 0   ;;  %s1183_s21 = smov 0  }
   0x3   :  { %s1185_s22 = smov 0   ;;  %s1187_s23 = smov 0  }
   0x4   :  { %s1189_s24 = smov 0   ;;  %s1191_s25 = smov 0  }
   0x5 LB: > { %s869_s26 = sadd.s32 4294967295, %s1144_s25   ;;  %s870_s27 = sadd.s32 4294967294, %s1144_s25   ;;  %s1144_s25 = sphi %s1191_s25, %s18_s25   ;;  %s1140_s24 = sphi %s1189_s24, %s1495_s24   ;;  %s1136_s23 = sphi %s1187_s23, %s1494_s23   ;;  %s1132_s22 = sphi %s1185_s22, %s1493_s22   ;;  %s1128_s21 = sphi %s1183_s21, %s1492_s21   ;;  %s1124_s20 = sphi %s1181_s20, %s1491_s20   ;;  %s1120_s19 = sphi %s1179_s19, %s1490_s19   ;;  %s1116_s18 = sphi %s1177_s18, %s1489_s18  }
   0x6   : > { %s27_s28 = sadd.s32 1, %s1136_s23  ;;  %s30_s29 = sadd.s32 1, %s1140_s24 }
   0x7   : > { %p28_p0 = scmp.ge.s32.totalorder %s27_s28, 2  ;;  %p157_p1 = scmp.ne.s32.totalorder %s1124_s20, %s1120_s19 }
   0x8   : > { %p158_p2 = scmp.eq.s32.totalorder %s869_s26, 3  ;;  %p163_p4 = scmp.ne.s32.totalorder %s1120_s19, %s1116_s18 }
   0x9   : > { %s1497_s28 = smov (%p28_p0, %s27_s28), 0  ;;  %s1499_s29 = smov (!%p28_p0, %s30_s29), %s1140_s24 }
   0xa   : > { %p1226_p3 = por %p158_p2, %p157_p1  ;;  %p32_p5 = scmp.ge.s32.totalorder %s1499_s29, 2 }
   0xb   : > { %p164_p6 = scmp.eq.s32.totalorder %s870_s27, 3  ;;  %p873_p7 = scmp.ge.s32.totalorder %s1144_s25, 1 }
   0xc   : > { %p202_p8 = scmp.lt.s32.totalorder %s1144_s25, 5  ;;  %s1501_s29 = smov (%p32_p5, %s1499_s29), 0 }
   0xd   : > { %p1236_p9 = por %p164_p6, %p163_p4  ;;  %s144_s7 = ssub.s32 %s1140_s24, %s1501_s29 }
   0xe   : > { %p203_p10 = pnand %p873_p7, %p202_p8  ;;  %s147_s8 = sadd.s32 1, %s1124_s20 }
   0xf   : > { %p145_p11 = scmp.eq.s32.totalorder %s144_s7, 0  ;;  %s227_s10 = sand.u32 (!%p203_p10), 1, %s1120_s19  }
  0x10   : > { %206 = sbr.rel (%p203_p10) target bundleno = 437 (0x1b5), region = 40  ;;  %p229_p12 = scmp.lt.s32.totalorder (!%p203_p10), %s1132_s22, 1 }
  0x11   : > { %s1244_s9 = scalar_select %p145_p11, %s1124_s20, %s147_s8  }
  0x12   : > { %s1254_s16 = scalar_lea.vmem (!%p203_p10), [#allocation3], %s227_s10  ;;  %p875_p13 = scmp.ne.s32.totalorder (!%p203_p10), %s1128_s21, 0 }
  0x15   : > { %s230_s11 = scalar_select %p229_p12, %s1132_s22, 1 }
  0x16   : > { %237 = sbr.rel (%p875_p13) target bundleno = 29 (0x1d), region = 44 }
  0x17   : > { %s976_s12 = smul.u32 288, %s230_s11 }
  0x19   : > { %s233_s15 = scalar_lea.vmem %s1481_s0, %s976_s12 }
  0x1b   : > { %vm238_vm0 = vcmask 253952   ;;  %v1146_v0 = vmov 0.0  }
  0x1c   : > { %239 = vst.msk [vmem:[#allocation2] sm:$0x1] %vm238_vm0, %v1146_v0 }
  0x1d PF: > { %v895_v1 = vld [vmem:[%s1482_s1 + $0x18] sm:$0xf]  ;;  %vm330_vm1 = vcmask 1043456   ;;  %v948_v2 = vld [vmem:[%s1482_s1 + $0x28] sm:$0xf]  ;;  %v894_v3 = vld [vmem:[%s1482_s1 + $0x10] sm:$0xff] }
  0x1e   : > { %970 = vmatpush.msk.msra.mxu3 %vm330_vm1, %v895_v1  ;;  %949 = vmatpush.msk.msra.mxu2 %vm330_vm1, %v948_v2  ;;  %v947_v4 = vld [vmem:[%s1482_s1 + $0x20] sm:$0xff]  ;;  %s876_s14 = sshll.u32 %s1128_s21, 7  ;;  %vm281_vm2 = vcmask 97280   ;;  %v259_v5 = vld [vmem:[%s1482_s1 + $0x8] sm:$0xf]  ;;  %vm705_vm3 = vcmask 261120  }
  0x1f   : > { %s1275_s27 = scalar_lea.vmem %s233_s15, %s876_s14  ;;  %896 = vmatpush.msk.msra.mxu0 %vm330_vm1, %v895_v1  ;;  %913 = vmatpush.msk.msra.mxu1 %vm330_vm1, %v259_v5  ;;  %v258_v6 = vld [vmem:[%s1482_s1] sm:$0xff]  ;;  %vm744_vm4 = vcmask 253952   ;;  %p966_p0 = scmp.ne.s32.totalorder %s1128_s21, 1 }
  0x20   : > { %971 = vmatpush.msra.mxu3 %v894_v3  ;;  %602 = vmatpush.msra.mxu2 %v947_v4  ;;  %v1283_v7 = vld [vmem:[%s1275_s27 + $0x70] sm:$0xff]  ;;  %v931_v8 = vld [vmem:[%s1275_s27 + $0x20] sm:$0xff]  ;;  %v891_v11 = vld [vmem:[%s1275_s27 + $0x78] sm:$0xff] }
  0x21   : > { %v878_v9 = vld [vmem:[%s1275_s27 + $0x10] sm:$0xff]  ;;  %909 = vmatmul.msk.f32.vlgmr.msra.gmra.mxu3 %vm281_vm2, %v1283_v7  ;;  %950 = vmatmul.msk.f32.vlgmr.msra.gmra.mxu2 %vm281_vm2, %v931_v8  ;;  %v242_v10 = vld [vmem:[%s1275_s27] sm:$0xff]  ;;  %v932_v12 = vld [vmem:[%s1275_s27 + $0x28] sm:$0xff] }
  0x22   : > { %349 = vmatpush.msra.mxu0 %v894_v3  ;;  %465 = vmatpush.msra.mxu1 %v258_v6  ;;  %v879_v13 = vld [vmem:[%s1275_s27 + $0x18] sm:$0xff]  ;;  %v243_v14 = vld [vmem:[%s1275_s27 + $0x8] sm:$0xff]  ;;  %v892_v15 = vld [vmem:[%s1275_s27 + $0x80] sm:$0xff] }
  0x23   : > { %897 = vmatmul.msk.f32.vlgmr.msra.gmra.mxu0 %vm281_vm2, %v878_v9  ;;  %914 = vmatmul.msk.f32.vlgmr.msra.gmra.mxu1 %vm281_vm2, %v242_v10  ;;  %v933_v16 = vld [vmem:[%s1275_s27 + $0x30] sm:$0xff]  ;;  %v893_v17 = vld [vmem:[%s1275_s27 + $0x88] sm:$0xff]  ;;  %v934_v18 = vld [vmem:[%s1275_s27 + $0x38] sm:$0xff] }
  0x24   : > { %972 = vmatpush.msk.msrb.mxu3 %vm330_vm1, %v259_v5  ;;  %v254_v19 = vld [vmem:[%s1275_s27 + $0x60] sm:$0xff]  ;;  %v255_v21 = vld [vmem:[%s1275_s27 + $0x68] sm:$0xff]  ;;  %v937_v23 = vld [vmem:[%s1275_s27 + $0x50] sm:$0xff] }
  0x25   : > { %v935_v20 = vld [vmem:[%s1275_s27 + $0x40] sm:$0xff]  ;;  %v936_v22 = vld [vmem:[%s1275_s27 + $0x48] sm:$0xff]  ;;  %v938_v24 = vld [vmem:[%s1275_s27 + $0x58] sm:$0xff] }
  0x26   : > { %973 = vmatpush.msrb.mxu3 %v258_v6  ;;  %v945_v25 = vld [vmem:[%s1275_s27 + $0x90] sm:$0xff]  ;;  %v946_v26 = vld [vmem:[%s1275_s27 + $0x98] sm:$0xff]  ;;  %v1376_v3 = vld [vmem:[%s1483_s2] ss:$0 sm:$0xff] }
  0x28   : > { %974 = vmatpush.msk.msra.mxu3 %vm330_vm1, %v948_v2 }
  0x29   : > { %910 = vmatmul.msk.f32.gmra.mxu3 %vm281_vm2, %v891_v11  ;;  %951 = vmatmul.msk.f32.gmra.mxu2 %vm281_vm2, %v932_v12 }
  0x2a   : > { %975 = vmatpush.msra.mxu3 %v947_v4 }
  0x2b   : > { %898 = vmatmul.msk.f32.gmra.mxu0 %vm281_vm2, %v879_v13  ;;  %915 = vmatmul.msk.f32.gmra.mxu1 %vm281_vm2, %v243_v14 }
  0x31   : > { %911 = vmatmul.msk.f32.gmra.mxu3 %vm281_vm2, %v892_v15  ;;  %952 = vmatmul.msk.f32.gmra.mxu2 %vm281_vm2, %v933_v16 }
  0x33   : > { %899 = vmatmul.msk.f32.gmra.mxu0 %vm281_vm2, %v931_v8  ;;  %916 = vmatmul.msk.f32.gmra.mxu1 %vm281_vm2, %v878_v9 }
  0x39   : > { %912 = vmatmul.msk.f32.gmra.mxu3 %vm281_vm2, %v893_v17  ;;  %953 = vmatmul.msk.f32.gmra.mxu2 %vm281_vm2, %v934_v18 }
  0x3b   : > { %900 = vmatmul.msk.f32.gmra.mxu0 %vm281_vm2, %v932_v12  ;;  %917 = vmatmul.msk.f32.gmra.mxu1 %vm281_vm2, %v879_v13 }
  0x41   : > { %926 = vmatmul.msk.f32.vlgmr.msrb.gmra.mxu3 %vm281_vm2, %v254_v19  ;;  %954 = vmatmul.msk.f32.gmra.mxu2 %vm281_vm2, %v935_v20 }
  0x43   : > { %901 = vmatmul.msk.f32.gmra.mxu0 %vm281_vm2, %v933_v16  ;;  %918 = vmatmul.msk.f32.gmra.mxu1 %vm281_vm2, %v931_v8 }
  0x49   : > { %927 = vmatmul.msk.f32.gmra.mxu3 %vm281_vm2, %v255_v21  ;;  %955 = vmatmul.msk.f32.gmra.mxu2 %vm281_vm2, %v936_v22 }
  0x4b   : > { %902 = vmatmul.msk.f32.gmra.mxu0 %vm281_vm2, %v934_v18  ;;  %919 = vmatmul.msk.f32.gmra.mxu1 %vm281_vm2, %v932_v12 }
  0x51   : > { %928 = vmatmul.msk.f32.gmra.mxu3 %vm281_vm2, %v1283_v7  ;;  %956 = vmatmul.msk.f32.gmra.mxu2 %vm281_vm2, %v937_v23 }
  0x53   : > { %903 = vmatmul.msk.f32.gmra.mxu0 %vm281_vm2, %v935_v20  ;;  %920 = vmatmul.msk.f32.gmra.mxu1 %vm281_vm2, %v933_v16 }
  0x59   : > { %929 = vmatmul.msk.f32.gmra.mxu3 %vm281_vm2, %v891_v11  ;;  %957 = vmatmul.msk.f32.gmra.mxu2 %vm281_vm2, %v938_v24 }
  0x5b   : > { %904 = vmatmul.msk.f32.gmra.mxu0 %vm281_vm2, %v936_v22  ;;  %921 = vmatmul.msk.f32.gmra.mxu1 %vm281_vm2, %v934_v18 }
  0x61   : > { %958 = vmatmul.msk.f32.gmra.mxu2 %vm281_vm2, %v254_v19  ;;  %962 = vmatmul.msk.f32.vlgmr.msra.gmra.mxu3 %vm281_vm2, %v892_v15 }
  0x63   : > { %905 = vmatmul.msk.f32.gmra.mxu0 %vm281_vm2, %v937_v23  ;;  %922 = vmatmul.msk.f32.gmra.mxu1 %vm281_vm2, %v935_v20 }
  0x69   : > { %959 = vmatmul.msk.f32.gmra.mxu2 %vm281_vm2, %v255_v21  ;;  %963 = vmatmul.msk.f32.gmra.mxu3 %vm281_vm2, %v893_v17 }
  0x6b   : > { %906 = vmatmul.msk.f32.gmra.mxu0 %vm281_vm2, %v938_v24  ;;  %923 = vmatmul.msk.f32.gmra.mxu1 %vm281_vm2, %v936_v22 }
  0x71   : > { %960 = vmatmul.msk.f32.gmra.mxu2 %vm281_vm2, %v1283_v7  ;;  %964 = vmatmul.msk.f32.gmra.mxu3 %vm281_vm2, %v945_v25 }
  0x73   : > { %907 = vmatmul.msk.f32.gmra.mxu0 %vm281_vm2, %v254_v19  ;;  %924 = vmatmul.msk.f32.gmra.mxu1 %vm281_vm2, %v937_v23 }
  0x79   : > { %961 = vmatmul.msk.f32.gmra.mxu2 %vm281_vm2, %v891_v11  ;;  %965 = vmatmul.msk.f32.gmra.mxu3 %vm281_vm2, %v946_v26 }
  0x7b   : > { %908 = vmatmul.msk.f32.gmra.mxu0 %vm281_vm2, %v255_v21  ;;  %925 = vmatmul.msk.f32.gmra.mxu1 %vm281_vm2, %v938_v24 }
  0xa0   : > { %v351_v27 = vpop.f32.mrf.mxu0  ;;  %v467_v28 = vpop.f32.mrf.mxu1 }
  0xa1   : > { %v468_v29 = vadd.f32 %v467_v28, %v351_v27 }
  0xa4   : > { %v1357_v30 = vpop.f32.mrf.mxu3  ;;  %v604_v31 = vpop.f32.mrf.mxu2 }
  0xa5   : > { %v652_v32 = vadd.f32 %v604_v31, %v468_v29 }
  0xa7   : > { %v672_v11 = vadd.f32 %v1376_v3, %v652_v32 }
  0xa8   : > { %v354_v33 = vpop.f32.mrf.mxu0  ;;  %v470_v34 = vpop.f32.mrf.mxu1 }
  0xa9   : > { %v471_v61 = vadd.f32 %v470_v34, %v354_v33  ;;  %v688_v21 = vmax.f32 %v672_v11, 0.0 }
  0xab   : > { %v706_v34 = vsel %vm705_vm3, %v688_v21, 0.0 }
  0xac   : > { %v1359_v35 = vpop.f32.mrf.mxu3  ;;  %v607_v36 = vpop.f32.mrf.mxu2 }
  0xad   : > { %v653_v2 = vadd.f32 %v607_v36, %v471_v61 }
  0xaf   : > { %v673_v9 = vadd.f32 %v1376_v3, %v653_v2 }
  0xb0   : > { %v357_v37 = vpop.f32.mrf.mxu0  ;;  %v473_v38 = vpop.f32.mrf.mxu1 }
  0xb1   : > { %v474_v62 = vadd.f32 %v473_v38, %v357_v37  ;;  %v689_v18 = vmax.f32 %v673_v9, 0.0 }
  0xb3   : > { %v707_v29 = vsel %vm705_vm3, %v689_v18, 0.0 }
  0xb4   : > { %v1361_v39 = vpop.f32.mrf.mxu3  ;;  %v610_v40 = vpop.f32.mrf.mxu2 }
  0xb5   : > { %v654_v4 = vadd.f32 %v610_v40, %v474_v62 }
  0xb7   : > { %v674_v12 = vadd.f32 %v1376_v3, %v654_v4 }
  0xb8   : > { %v360_v41 = vpop.f32.mrf.mxu0  ;;  %v476_v42 = vpop.f32.mrf.mxu1 }
  0xb9   : > { %v477_v63 = vadd.f32 %v476_v42, %v360_v41  ;;  %v690_v22 = vmax.f32 %v674_v12, 0.0  ;;  %v708_v41 = vadd.f32 %v707_v29, %v706_v34 }
  0xbb   : > { %v709_v36 = vsel %vm705_vm3, %v690_v22, 0.0 }
  0xbc   : > { %v1363_v43 = vpop.f32.mrf.mxu3  ;;  %v613_v44 = vpop.f32.mrf.mxu2 }
  0xbd   : > { %v655_v6 = vadd.f32 %v613_v44, %v477_v63 }
  0xbf   : > { %v675_v15 = vadd.f32 %v1376_v3, %v655_v6 }
  0xc0   : > { %v363_v45 = vpop.f32.mrf.mxu0  ;;  %v479_v46 = vpop.f32.mrf.mxu1 }
  0xc1   : > { %v480_v5 = vadd.f32 %v479_v46, %v363_v45  ;;  %v691_v26 = vmax.f32 %v675_v15, 0.0 }
  0xc3   : > { %v711_v42 = vsel %vm705_vm3, %v691_v26, 0.0 }
  0xc4   : > { %v1365_v47 = vpop.f32.mrf.mxu3  ;;  %v616_v48 = vpop.f32.mrf.mxu2 }
  0xc5   : > { %v656_v13 = vadd.f32 %v616_v48, %v480_v5  ;;  %v504_v2 = vadd.f32 %v1365_v47, %v1357_v30 }
  0xc7   : > { %v676_v23 = vadd.f32 %v1376_v3, %v656_v13 }
  0xc8   : > { %v366_v49 = vpop.f32.mrf.mxu0  ;;  %v482_v50 = vpop.f32.mrf.mxu1 }
  0xc9   : > { %v483_v10 = vadd.f32 %v482_v50, %v366_v49  ;;  %v692_v37 = vmax.f32 %v676_v23, 0.0 }
  0xcc   : > { %v1367_v51 = vpop.f32.mrf.mxu3  ;;  %v619_v52 = vpop.f32.mrf.mxu2 }
  0xcd   : > { %v657_v19 = vadd.f32 %v619_v52, %v483_v10  ;;  %v710_v52 = vadd.f32 %v709_v36, %v708_v41 }
  0xcf   : > { %v677_v31 = vadd.f32 %v1376_v3, %v657_v19 }
  0xd0   : > { %v369_v53 = vpop.f32.mrf.mxu0  ;;  %v485_v54 = vpop.f32.mrf.mxu1 }
  0xd1   : > { %v486_v14 = vadd.f32 %v485_v54, %v369_v53  ;;  %v693_v46 = vmax.f32 %v677_v31, 0.0  ;;  %v713_v53 = vsel %vm705_vm3, %v692_v37, 0.0 }
  0xd3   : > { %v715_v61 = vsel %vm705_vm3, %v693_v46, 0.0 }
  0xd4   : > { %v1369_v55 = vpop.f32.mrf.mxu3  ;;  %v622_v56 = vpop.f32.mrf.mxu2 }
  0xd5   : > { %v658_v24 = vadd.f32 %v622_v56, %v486_v14  ;;  %v510_v30 = vadd.f32 %v1369_v55, %v1361_v39 }
  0xd7   : > { %v678_v38 = vadd.f32 %v1376_v3, %v658_v24 }
  0xd8   : > { %v372_v57 = vpop.f32.mrf.mxu0  ;;  %v488_v58 = vpop.f32.mrf.mxu1 }
  0xd9   : > { %v489_v20 = vadd.f32 %v488_v58, %v372_v57  ;;  %v694_v54 = vmax.f32 %v678_v38, 0.0  ;;  %v712_v57 = vadd.f32 %v711_v42, %v710_v52 }
  0xdb   : > { %v717_v4 = vsel %vm705_vm3, %v694_v54, 0.0  ;;  %v704_v54 = vld [vmem:[#allocation2] sm:$0x1] }
  0xdc   : > { %v1371_v59 = vpop.f32.mrf.mxu3  ;;  %v625_v60 = vpop.f32.mrf.mxu2 }
  0xdd   : > { %v659_v32 = vadd.f32 %v625_v60, %v489_v20  ;;  %v513_v19 = vadd.f32 %v1371_v59, %v1363_v43 }
  0xdf   : > { %v679_v48 = vadd.f32 %v1376_v3, %v659_v32 }
  0xe0   : > { %v375_v0 = vpop.f32.mrf.mxu0  ;;  %v491_v1 = vpop.f32.mrf.mxu1 }
  0xe1   : > { %v492_v25 = vadd.f32 %v491_v1, %v375_v0  ;;  %v695_v62 = vmax.f32 %v679_v48, 0.0  ;;  %v714_v1 = vadd.f32 %v713_v53, %v712_v57 }
  0xe3   : > { %v716_v9 = vadd.f32 %v715_v61, %v714_v1  ;;  %v719_v12 = vsel %vm705_vm3, %v695_v62, 0.0 }
  0xe4   : > { %v628_v7 = vpop.f32.mrf.mxu2  ;;  %v640_v8 = vpop.f32.mrf.mxu3 }
  0xe5   : > { %v660_v40 = vadd.f32 %v628_v7, %v492_v25  ;;  %v507_v7 = vadd.f32 %v1367_v51, %v1359_v35  ;;  %v664_v13 = vadd.f32 %v640_v8, %v504_v2 }
  0xe7   : > { %v680_v56 = vadd.f32 %v1376_v3, %v660_v40  ;;  %v684_v21 = vadd.f32 %v1376_v3, %v664_v13 }
  0xe8   : > { %v378_v16 = vpop.f32.mrf.mxu0  ;;  %v494_v17 = vpop.f32.mrf.mxu1 }
  0xe9   : > { %v495_v33 = vadd.f32 %v494_v17, %v378_v16  ;;  %v696_v5 = vmax.f32 %v680_v56, 0.0  ;;  %v718_v16 = vadd.f32 %v717_v4, %v716_v9 }
  0xeb   : > { %v721_v47 = vsel %vm705_vm3, %v696_v5, 0.0  ;;  %v720_v35 = vadd.f32 %v719_v12, %v718_v16 }
  0xec   : > { %v631_v27 = vpop.f32.mrf.mxu2  ;;  %v643_v28 = vpop.f32.mrf.mxu3 }
  0xed   : > { %v661_v49 = vadd.f32 %v631_v27, %v495_v33  ;;  %v665_v17 = vadd.f32 %v643_v28, %v507_v7  ;;  %v722_v24 = vadd.f32 %v721_v47, %v720_v35  ;;  %v700_v28 = vmax.f32 %v684_v21, 0.0 }
  0xef   : > { %v681_v63 = vadd.f32 %v1376_v3, %v661_v49  ;;  %v685_v25 = vadd.f32 %v1376_v3, %v665_v17  ;;  %v729_v36 = vsel %vm705_vm3, %v700_v28, 0.0 }
  0xf0   : > { %v381_v44 = vpop.f32.mrf.mxu0  ;;  %v497_v45 = vpop.f32.mrf.mxu1 }
  0xf1   : > { %v498_v50 = vadd.f32 %v497_v45, %v381_v44  ;;  %v697_v14 = vmax.f32 %v681_v63, 0.0  ;;  %v701_v31 = vmax.f32 %v685_v25, 0.0 }
  0xf3   : > { %v723_v8 = vsel %vm705_vm3, %v697_v14, 0.0  ;;  %v731_v40 = vsel %vm705_vm3, %v701_v31, 0.0 }
  0xf4   : > { %v634_v58 = vpop.f32.mrf.mxu2  ;;  %v646_v60 = vpop.f32.mrf.mxu3  ;;  %v724_v27 = vadd.f32 %v723_v8, %v722_v24 }
  0xf5   : > { %v662_v0 = vadd.f32 %v634_v58, %v498_v50  ;;  %v666_v22 = vadd.f32 %v646_v60, %v510_v30 }
  0xf7   : > { %v682_v6 = vadd.f32 %v1376_v3, %v662_v0  ;;  %v686_v43 = vadd.f32 %v1376_v3, %v666_v22 }
  0xf8   : > { %v384_v10 = vpop.f32.mrf.mxu0  ;;  %v500_v11 = vpop.f32.mrf.mxu1 }
  0xf9   : > { %v501_v15 = vadd.f32 %v500_v11, %v384_v10  ;;  %v698_v18 = vmax.f32 %v682_v6, 0.0  ;;  %v702_v37 = vmax.f32 %v686_v43, 0.0 }
  0xfb   : > { %v725_v39 = vsel %vm705_vm3, %v698_v18, 0.0  ;;  %v733_v44 = vsel %vm705_vm3, %v702_v37, 0.0 }
  0xfc   : > { %v637_v51 = vpop.f32.mrf.mxu2  ;;  %v649_v20 = vpop.f32.mrf.mxu3  ;;  %v726_v29 = vadd.f32 %v725_v39, %v724_v27 }
  0xfd   : > { %v663_v23 = vadd.f32 %v637_v51, %v501_v15  ;;  %v667_v26 = vadd.f32 %v649_v20, %v513_v19 }
  0xff   : > { %v683_v55 = vadd.f32 %v1376_v3, %v663_v23  ;;  %v687_v33 = vadd.f32 %v1376_v3, %v667_v26 }
 0x101   : > { %v699_v59 = vmax.f32 %v683_v55, 0.0  ;;  %v703_v41 = vmax.f32 %v687_v33, 0.0 }
 0x103   : > { %v727_v32 = vsel %vm705_vm3, %v699_v59, 0.0  ;;  %v735_v46 = vsel %vm705_vm3, %v703_v41, 0.0 }
 0x104   : > { %v728_v34 = vadd.f32 %v727_v32, %v726_v29 }
 0x106   : > { %v730_v38 = vadd.f32 %v729_v36, %v728_v34 }
 0x108   : > { %v732_v42 = vadd.f32 %v731_v40, %v730_v38 }
 0x10a   : > { %v734_v45 = vadd.f32 %v733_v44, %v732_v42 }
 0x10c   : > { %v736_v48 = vadd.f32 %v735_v46, %v734_v45 }
 0x10e   : > { %v737_v49 = vrot.slane %v736_v48, 4 }
 0x110   : > { %v738_v50 = vadd.f32 %v737_v49, %v736_v48 }
 0x112   : > { %v739_v52 = vrot.slane %v738_v50, 2 }
 0x114   : > { %v740_v53 = vadd.f32 %v739_v52, %v738_v50 }
 0x116   : > { %v741_v3 = vrot.slane %v740_v53, 1 }
 0x118   : > { %v742_v56 = vadd.f32 %v741_v3, %v740_v53  ;;  %749 = sbr.rel (%p966_p0) target bundleno = 423 (0x1a7), region = 48 }
 0x11a   : > { %v743_v57 = vadd.f32 %v742_v56, %v704_v54 }
 0x11c   : > { %745 = vst.msk [vmem:[#allocation2] sm:$0x1] %vm744_vm4, %v743_v57 }
 0x11d   : > { %v755_v58 = vld [vmem:[%s1484_s3 + $0x18] sm:$0xff]  ;;  %v754_v60 = vld [vmem:[%s1484_s3 + $0x10] sm:$0xff]  ;;  %v753_v62 = vld [vmem:[%s1484_s3 + $0x8] sm:$0xff]  ;;  %vm780_vm5 = vcmask 73728  }
 0x11e   : > { %772 = vmatpush.msra.mxu0 %v755_v58  ;;  %v752_v63 = vld [vmem:[%s1484_s3] sm:$0xff] }
 0x11f   : > { %v756_v1 = vld [vmem:[%s1485_s4] sm:$0x1] }
 0x120   : > { %773 = vmatpush.msra.mxu0 %v754_v60 }
 0x122   : > { %774 = vmatpush.msra.mxu0 %v753_v62 }
 0x123   : > { %v750_v61 = vld [vmem:[#allocation2] sm:$0x1] }
 0x124   : > { %v751_v0 = vmul.f32 0.00390625, %v750_v61  ;;  %775 = vmatpush.msra.mxu0 %v752_v63 }
 0x126   : > { %967 = vmatmul.msk.f32.vlgmr.msra.gmra.mxu0 %vm705_vm3, %v751_v0 }
 0x1a3   : > { %v777_v2 = vpop.f32.mrf.mxu0 }
 0x1a4   : > { %v778_v4 = vadd.f32 %v777_v2, %v756_v1 }
 0x1a6   : > { %781 = vst.msk [vmem:[%s1254_s16] sm:$0x1] %vm780_vm5, %v778_v4 }
 0x1a7 PF: > { %s791_s13 = scalar_lea.hbm %s1486_s5, %s1132_s22  ;;  %s793_s14 = sshll.u32 %s1254_s16, 4  ;;  %s794_s14 = int_to_ptr.vmem [resolvable:$true] %s793_s14 }
 0x1a8   : > { %s795_s17 = sshll.u32 %s791_s13, 4  ;;  %s783_s26 = scalar_lea.sflag [#allocation4], %s227_s10  ;;  %s796_s17 = int_to_ptr.hbm [resolvable:$true] %s795_s17 }
 0x1a9   : > { %s1064_s27 = sshra.s32 %s796_s17, 4  ;;  %s1070_s15 = scalar_lea.hbm %s1486_s5, 2  ;;  %s1065_s27 = int_to_ptr.hbm [resolvable:$true] %s1064_s27 }
 0x1aa   : > { %s1066_s7 = scalar_lea.hbm %s1065_s27, 1  ;;  %p1071_p5 = scmp.lt.s32.totalorder %s1065_s27, %s1486_s5 }
 0x1ab   : > { %p1067_p1 = scmp.ne.s32.totalorder %s1065_s27, %s1066_s7  ;;  %p1072_p6 = scmp.lt.s32.totalorder %s1070_s15, %s1066_s7 }
 0x1ad   : > { %p1068_p2 = pnand %p1067_p1, %p1226_p3  ;;  %p1073_p7 = por %p1072_p6, %p1071_p5 }
 0x1af   : > { %p1069_p4 = pneg %p1068_p2 }
 0x1b1   : > { %p1074_p8 = pnand %p1073_p7, %p1069_p4 }
 0x1b3   : > { %1077 = shalt.err (!%p1074_p8)
}
 0x1b4   : > { %977 = dma.vmem_to_hbm [thread:$0]  (%p1226_p3), %s794_s14, 16, %s796_s17, %s783_s26  }
 0x1b5 PF: > { %p983_p10 = scmp.ge.s32.totalorder %s1144_s25, 2  ;;  %s807_s22 = sand.u32 1, %s1116_s18  }
 0x1b6   : > { %s808_s10 = scalar_lea.sflag [#allocation4], %s807_s22 }
 0x1b7   : > { %p980_p11 = pnand %p983_p10, %p1236_p9 }
 0x1b9   : > { %p981_p12 = pneg %p980_p11 }
 0x1bb   : > { %1111 = dma.done.wait (%p981_p12), %s808_s10, 16  }
 0x1bc   : > { %1113 = vsyncadd (%p981_p12), %s808_s10, 4294967280  ;;  %s18_s25 = sadd.s32 1, %s1144_s25   ;;  %s1489_s18 = smov %s1120_s19 }
 0x1bd   : > { %p15_p13 = scmp.ge.s32.totalorder %s18_s25, 6   ;;  %s1490_s19 = smov %s1124_s20 }
 0x1be   : > { %s1491_s20 = smov %s1244_s9  ;;  %s1492_s21 = smov %s1136_s23 }
 0x1bf   : > { %s1493_s22 = smov %s1140_s24  ;;  %s1494_s23 = smov %s1497_s28 }
 0x1c0   : > { %s1495_s24 = smov %s1501_s29  ;;  %17 = sbr.rel (!%p15_p13) target bundleno = 5 (0x5), region = 88 }
 0x1c5   :  { %813 = vsyncpa [#allocation4], 1 }
 0x1c6   :  { %815 = vsyncpa [#allocation4 + $0x1], 1 }

</bundles_post_ra>
